<compile_context>
chip_gen: v6e
topology: v6e:2x2x1
jax: 0.10.0
libtpu: 0.0.40
codegen_flags: <defaults>
</compile_context>

<pallas_src>
import math
from functools import lru_cache

import jax
import jax.numpy as jnp
from jax.experimental import pallas as pl
from jax.experimental.pallas import tpu as pltpu


# ----------------------------------------------------------------------------
# Basis construction (plain Python "glue", mirrors the torch helpers)
# ----------------------------------------------------------------------------
def hilbert_dim(nb_modes: int, nb_photons: int) -> int:
    """Dimension of the Fock space with `nb_photons` photons in `nb_modes` modes."""
    return math.comb(nb_modes + nb_photons - 1, nb_photons)


@lru_cache(maxsize=None)
def get_photon_basis(nb_modes: int, nb_photons: int):
    """All occupation-number tuples of length nb_modes summing to nb_photons."""
    if nb_modes == 1:
        return [(nb_photons,)]
    basis = []
    for k in range(nb_photons, -1, -1):
        for rest in get_photon_basis(nb_modes - 1, nb_photons - k):
            basis.append((k,) + rest)
    return basis


def basis_dictionary_image_to_larger_fock(d1, d2, add1, add2):
    dictionary = {}
    fock_basis = get_photon_basis(d1 + d2 + add1 + add2, 2)
    for i in range(d1):
        for j in range(d2):
            fock_state = [0] * (d1 + d2 + add1 + add2)
            fock_state[add1 + i] = 1
            fock_state[add1 + d1 + j] = 1
            dictionary[i * d2 + j] = fock_basis.index(tuple(fock_state))
    return dictionary


def image_to_fock_rows(d1, d2, add1, add2):
    """Static row table: column k of the passage matrix has its single 1 at rows[k]."""
    fock_image_dict = basis_dictionary_image_to_larger_fock(d1, d2, add1, add2)
    return tuple(fock_image_dict[k] for k in range(d1 * d2))


# ----------------------------------------------------------------------------
# Static run tables for the scatter kernel
# ----------------------------------------------------------------------------
def _coalesce_runs(rows):
    """Maximal (k_start, row_start, length) runs where consecutive image
    indices map to consecutive Fock rows."""
    runs = []
    k, n = 0, len(rows)
    while k < n:
        k0, r0, length = k, rows[k], 1
        while k + length < n and rows[k + length] == r0 + length:
            length += 1
        runs.append((k0, r0, length))
        k += length
    return runs


def _gap_runs(rows, fock_dim):
    """Maximal (row_start, length) runs of Fock rows NOT hit by the scatter."""
    covered = [False] * fock_dim
    for r in rows:
        covered[r] = True
    gaps, r = [], 0
    while r < fock_dim:
        if covered[r]:
            r += 1
            continue
        r0 = r
        while r < fock_dim and not covered[r]:
            r += 1
        gaps.append((r0, r - r0))
    return gaps


# ----------------------------------------------------------------------------
# Pallas kernel: zero only the gap rows, then K coalesced row copies.
# ----------------------------------------------------------------------------
def _make_scatter_kernel(copy_runs, gap_runs):
    def kernel(x_ref, o_ref):
        tb = o_ref.shape[1]
        # Rows of the Fock vector never hit by the scatter are exactly zero.
        for r0, length in gap_runs:
            o_ref[pl.ds(r0, length), :] = jnp.zeros((length, tb), o_ref.dtype)
        # Static, coalesced row copies (pure data movement; no MXU, no P load).
        for k0, r0, length in copy_runs:
            o_ref[pl.ds(r0, length), :] = x_ref[pl.ds(k0, length), :]
    return kernel


def _round_up(x, m):
    return ((x + m - 1) // m) * m


def _round_down(x, m):
    return (x // m) * m


def _vmem_capacity_bytes():
    """Per-core VMEM capacity; conservative fallback if the query fails."""
    try:
        info = pltpu.get_tpu_info()
        cap = int(getattr(info, "vmem_capacity_bytes", 0))
        if cap > 0:
            return cap
    except Exception:
        pass
    return 64 << 20  # v7x per-TensorCore VMEM (smallest current generation)


# ----------------------------------------------------------------------------
# Forward: equivalent of `Passage_matrix.to(float32) @ input_state`
# ----------------------------------------------------------------------------
def basis_change_forward(rows, fock_dim, input_state):
    x = jnp.asarray(input_state, jnp.float32)
    k_dim = len(rows)
    idx = jnp.asarray(rows, dtype=jnp.int32)

    if x.ndim == 1:
        # Tiny matvec: pallas_call fixed cost dominates; XLA scatter fuses
        # with surrounding ops.
        return jnp.zeros((fock_dim,), jnp.float32).at[idx].set(x)

    assert x.shape[0] == k_dim, f"expected leading dim {k_dim}, got {x.shape}"
    b_dim = x.shape[1]

    if b_dim < 128:
        # Sub-lane-width batch: padding to 128 lanes wastes bandwidth and still
        # pays pallas_call fixed cost -> plain XLA scatter wins here.
        return jnp.zeros((fock_dim, b_dim), jnp.float32).at[idx].set(x)

    # --- Pallas path --------------------------------------------------------
    # Pad the batch only to a lane multiple (128); the grid uses cdiv and
    # Pallas handles the partial last block (no full-tile padding tax).
    b_pad = _round_up(b_dim, 128)
    if b_pad != b_dim:
        x = jnp.pad(x, ((0, 0), (0, b_pad - b_dim)))

    # Generation-aware batch-tile sizing: double-buffered (K + D) f32 rows per
    # lane must fit a conservative slice of VMEM (64 MiB on v7x, 128 MiB on
    # v5e/v6e; v5e's default *scoped* limit is only 16 MiB, so we also set
    # vmem_limit_bytes explicitly below).
    bytes_per_lane = 2 * (k_dim + fock_dim) * 4          # 2 = double buffering
    budget = min(_vmem_capacity_bytes() // 4, 24 << 20)
    tb = _round_down(max(budget // bytes_per_lane, 128), 128)
    tb = max(128, min(tb, b_pad))

    # Keep both v7x TensorCores busy: if the whole batch fits one tile, split
    # it in two (one extra ~0.35us grid step on single-TC chips, negligible).
    if tb >= b_pad and b_pad >= 256:
        tb = _round_up((b_pad + 1) // 2, 128)

    grid_b = pl.cdiv(b_pad, tb)
    vmem_limit = int(bytes_per_lane * tb + (16 << 20))   # usage + headroom

    kernel = _make_scatter_kernel(_coalesce_runs(rows), _gap_runs(rows, fock_dim))

    out = pl.pallas_call(
        kernel,
        out_shape=jax.ShapeDtypeStruct((fock_dim, b_pad), jnp.float32),
        grid=(grid_b,),
        in_specs=[pl.BlockSpec((k_dim, tb), lambda b: (0, b))],
        out_specs=pl.BlockSpec((fock_dim, tb), lambda b: (0, b)),
        compiler_params=pltpu.CompilerParams(
            dimension_semantics=("parallel",),
            vmem_limit_bytes=vmem_limit),
        cost_estimate=pl.CostEstimate(
            flops=0,
            transcendentals=0,
            bytes_accessed=(k_dim + fock_dim) * 4 * b_pad),
    )(x)

    if b_pad != b_dim:
        out = out[:, :b_dim]
    return out


class BasisChangeImageToLargerFock:
    """JAX/Pallas port of Basis_Change_Image_to_larger_Fock_state_vector."""

    def __init__(self, d1, d2, add1, add2):
        self.fock_dim = hilbert_dim(d1 + d2 + add1 + add2, 2)
        self.image_dim = d1 * d2
        # Only the static row table is kept; the dense 0/1 passage matrix is
        # never materialized on device.
        self.rows = image_to_fock_rows(d1, d2, add1, add2)
        # The scatter relies on every image index hitting a distinct Fock row
        # (exactly one 1 per column of the passage matrix).
        assert len(set(self.rows)) == len(self.rows), "duplicate Fock rows"

    def __call__(self, input_state):
        return basis_change_forward(self.rows, self.fock_dim, input_state)


# ----------------------------------------------------------------------------
# Demo / self-check (reference = dense P @ x, built only for verification)
# ----------------------------------------------------------------------------
if __name__ == "__main__":
    d1, d2, add1, add2 = 4, 4, 2, 2          # 12 modes, D = C(13, 2) = 78, K = 16
    module = BasisChangeImageToLargerFock(d1, d2, add1, add2)
    D, K = module.fock_dim, module.image_dim

    # Dense reference passage matrix (verification only).
    p_ref = jnp.zeros((D, K), jnp.float32).at[
        jnp.asarray(module.rows), jnp.arange(K)].set(1.0)

    key = jax.random.PRNGKey(0)
    k1, k2, k3, k4 = jax.random.split(key, 4)

    # 1-D state (matches `P @ input_state` with a vector) -> XLA scatter path.
    x_vec = jax.random.normal(k1, (K,), dtype=jnp.float32)
    out_vec = jax.block_until_ready(module(x_vec))
    assert out_vec.shape == (D,)
    assert jnp.allclose(out_vec, p_ref @ x_vec, atol=1e-6)

    # Tiny batch (< 128 lanes) -> XLA scatter fallback.
    x_small = jax.random.normal(k2, (K, 3), dtype=jnp.float32)
    out_small = jax.block_until_ready(module(x_small))
    assert out_small.shape == (D, 3)
    assert jnp.allclose(out_small, p_ref @ x_small, atol=1e-6)

    # Lane-aligned batch -> Pallas kernel, split into 2 tiles (megacore-friendly).
    x_mid = jax.random.normal(k3, (K, 384), dtype=jnp.float32)
    out_mid = jax.block_until_ready(module(x_mid))
    assert out_mid.shape == (D, 384)
    assert jnp.allclose(out_mid, p_ref @ x_mid, atol=1e-6)

    # Non-aligned larger batch -> Pallas kernel with partial last block.
    x_big = jax.random.normal(k4, (K, 1100), dtype=jnp.float32)
    out_big = jax.block_until_ready(module(x_big))
    assert out_big.shape == (D, 1100)
    assert jnp.allclose(out_big, p_ref @ x_big, atol=1e-6)

    print("KERNEL_OK")
</pallas_src>

<mosaic_0001>
module attributes {stable_mosaic.version = 11 : i64} {
  func.func @kernel(%arg0: i32, %arg1: memref<16x256xf32, #tpu.memory_space<vmem>>, %arg2: memref<78x256xf32, #tpu.memory_space<vmem>>) attributes {dimension_semantics = [#tpu.dimension_semantics<parallel>], iteration_bounds = array<i64: 2>, scalar_prefetch = 0 : i64, scratch_operands = 0 : i64, tpu.core_type = #tpu.core_type<tc>, window_params = [{transform_indices = @transform_0, window_bounds = array<i64: 16, 256>}, {transform_indices = @transform_1, window_bounds = array<i64: 78, 256>}]} {
    %cst = arith.constant 0.000000e+00 : f32
    %0 = vector.broadcast %cst : f32 to vector<27x256xf32>
    %c0 = arith.constant 0 : index
    %c0_0 = arith.constant 0 : index
    %1 = vector.load %arg2[%c0, %c0_0] : memref<78x256xf32, #tpu.memory_space<vmem>>, vector<27x256xf32>
    tpu.vector_store %arg2[%c0, %c0_0], %0 {strides = array<i32>} : memref<78x256xf32, #tpu.memory_space<vmem>>, vector<27x256xf32>,
    %cst_1 = arith.constant 0.000000e+00 : f32
    %2 = vector.broadcast %cst_1 : f32 to vector<5x256xf32>
    %c31 = arith.constant 31 : index
    %c0_2 = arith.constant 0 : index
    %3 = vector.load %arg2[%c31, %c0_2] : memref<78x256xf32, #tpu.memory_space<vmem>>, vector<5x256xf32>
    tpu.vector_store %arg2[%c31, %c0_2], %2 {strides = array<i32>} : memref<78x256xf32, #tpu.memory_space<vmem>>, vector<5x256xf32>,
    %cst_3 = arith.constant 0.000000e+00 : f32
    %4 = vector.broadcast %cst_3 : f32 to vector<4x256xf32>
    %c40 = arith.constant 40 : index
    %c0_4 = arith.constant 0 : index
    %5 = vector.load %arg2[%c40, %c0_4] : memref<78x256xf32, #tpu.memory_space<vmem>>, vector<4x256xf32>
    tpu.vector_store %arg2[%c40, %c0_4], %4 {strides = array<i32>} : memref<78x256xf32, #tpu.memory_space<vmem>>, vector<4x256xf32>,
    %cst_5 = arith.constant 0.000000e+00 : f32
    %6 = vector.broadcast %cst_5 : f32 to vector<3x256xf32>
    %c48 = arith.constant 48 : index
    %c0_6 = arith.constant 0 : index
    %7 = vector.load %arg2[%c48, %c0_6] : memref<78x256xf32, #tpu.memory_space<vmem>>, vector<3x256xf32>
    tpu.vector_store %arg2[%c48, %c0_6], %6 {strides = array<i32>} : memref<78x256xf32, #tpu.memory_space<vmem>>, vector<3x256xf32>,
    %cst_7 = arith.constant 0.000000e+00 : f32
    %8 = vector.broadcast %cst_7 : f32 to vector<23x256xf32>
    %c55 = arith.constant 55 : index
    %c0_8 = arith.constant 0 : index
    %9 = vector.load %arg2[%c55, %c0_8] : memref<78x256xf32, #tpu.memory_space<vmem>>, vector<23x256xf32>
    tpu.vector_store %arg2[%c55, %c0_8], %8 {strides = array<i32>} : memref<78x256xf32, #tpu.memory_space<vmem>>, vector<23x256xf32>,
    %c0_9 = arith.constant 0 : index
    %c0_10 = arith.constant 0 : index
    %10 = vector.load %arg1[%c0_9, %c0_10] : memref<16x256xf32, #tpu.memory_space<vmem>>, vector<4x256xf32>
    %c27 = arith.constant 27 : index
    %c0_11 = arith.constant 0 : index
    %11 = vector.load %arg2[%c27, %c0_11] : memref<78x256xf32, #tpu.memory_space<vmem>>, vector<4x256xf32>
    tpu.vector_store %arg2[%c27, %c0_11], %10 {strides = array<i32>} : memref<78x256xf32, #tpu.memory_space<vmem>>, vector<4x256xf32>,
    %c4 = arith.constant 4 : index
    %c0_12 = arith.constant 0 : index
    %12 = vector.load %arg1[%c4, %c0_12] : memref<16x256xf32, #tpu.memory_space<vmem>>, vector<4x256xf32>
    %c36 = arith.constant 36 : index
    %c0_13 = arith.constant 0 : index
    %13 = vector.load %arg2[%c36, %c0_13] : memref<78x256xf32, #tpu.memory_space<vmem>>, vector<4x256xf32>
    tpu.vector_store %arg2[%c36, %c0_13], %12 {strides = array<i32>} : memref<78x256xf32, #tpu.memory_space<vmem>>, vector<4x256xf32>,
    %c8 = arith.constant 8 : index
    %c0_14 = arith.constant 0 : index
    %14 = vector.load %arg1[%c8, %c0_14] : memref<16x256xf32, #tpu.memory_space<vmem>>, vector<4x256xf32>
    %c44 = arith.constant 44 : index
    %c0_15 = arith.constant 0 : index
    %15 = vector.load %arg2[%c44, %c0_15] : memref<78x256xf32, #tpu.memory_space<vmem>>, vector<4x256xf32>
    tpu.vector_store %arg2[%c44, %c0_15], %14 {strides = array<i32>} : memref<78x256xf32, #tpu.memory_space<vmem>>, vector<4x256xf32>,
    %c12 = arith.constant 12 : index
    %c0_16 = arith.constant 0 : index
    %16 = vector.load %arg1[%c12, %c0_16] : memref<16x256xf32, #tpu.memory_space<vmem>>, vector<4x256xf32>
    %c51 = arith.constant 51 : index
    %c0_17 = arith.constant 0 : index
    %17 = vector.load %arg2[%c51, %c0_17] : memref<78x256xf32, #tpu.memory_space<vmem>>, vector<4x256xf32>
    tpu.vector_store %arg2[%c51, %c0_17], %16 {strides = array<i32>} : memref<78x256xf32, #tpu.memory_space<vmem>>, vector<4x256xf32>,
    return
  }
  func.func @transform_0(%arg0: i32) -> (i32, i32) {
    %c0_i32 = arith.constant 0 : i32
    %c0_i32_0 = arith.constant 0 : i32
    return %c0_i32, %arg0 : i32, i32
  }
  func.func @transform_1(%arg0: i32) -> (i32, i32) {
    %c0_i32 = arith.constant 0 : i32
    %c0_i32_0 = arith.constant 0 : i32
    return %c0_i32, %arg0 : i32, i32
  }
}

</mosaic_0001>

<bundles_post_ra>
// kernel: tpu_custom_call.1
= control target key start
LH: loop header
LB: loop body
LE: loop exit
PB: predicated region body
PF: predicated region fallthrough
CT: control target
= control target key end

     0   :  { %6 = vsyncpa [#allocation3], 0  ;;  %s709_s0 = inlined_call_operand.hbm [shape: f32[16,384], index: 0, kind: input, shape index: {}]   ;;  %s710_s1 = inlined_call_operand.hbm [shape: f32[78,384], index: 1, kind: output, shape index: {}]  }
   0x1   :  { %8 = vsyncpa [#allocation3 + $0x1], 0 }
   0x2   :  { %9 = vsyncpa [#allocation4], 0 }
   0x3   :  { %11 = vsyncpa [#allocation4 + $0x1], 0  ;;  %s483_s6 = smov 0   ;;  %s485_s7 = smov 0  }
   0x4   :  { %s487_s8 = smov 0   ;;  %s489_s9 = smov 0  }
   0x5 LB: > { %s504_s10 = sadd.s32 4294967295, %s464_s9   ;;  %s304_s11 = sadd.s32 4294967294, %s464_s9   ;;  %s464_s9 = sphi %s489_s9, %s720_s9   ;;  %s460_s8 = sphi %s487_s8, %s719_s8   ;;  %s456_s7 = sphi %s485_s7, %s718_s7   ;;  %s452_s6 = sphi %s483_s6, %s717_s6  }
   0x6   : > { %s508_s12 = sadd.s32 1, %s464_s9   ;;  %s24_s13 = sadd.s32 1, %s460_s8 }
   0x7   : > { %s21_s14 = ssub.s32 %s464_s9, %s508_s12  ;;  %p31_p0 = scmp.ne.s32.totalorder %s460_s8, %s456_s7 }
   0x8   : > { %p22_p1 = scmp.eq.s32.totalorder %s21_s14, 0  ;;  %p32_p2 = scmp.eq.s32.totalorder %s464_s9, 0 }
   0x9   : > { %p37_p3 = scmp.ne.s32.totalorder %s456_s7, %s452_s6  ;;  %p38_p4 = scmp.eq.s32.totalorder %s504_s10, 0 }
   0xa   : > { %s520_s15 = scalar_select %p22_p1, %s460_s8, %s24_s13  }
   0xb   : > { %p33_p5 = por %p32_p2, %p31_p0  ;;  %p522_p6 = por %p38_p4, %p37_p3 }
   0xc   : > { %p61_p7 = scmp.eq.s32.totalorder %s504_s10, 1  ;;  %p67_p8 = scmp.eq.s32.totalorder %s304_s11, 1 }
   0xd   : > { %p711_p11 = scmp.ge.s32.totalorder %s464_s9, 2 }
   0xe   : > { %p527_p9 = por %p61_p7, %p31_p0  ;;  %p531_p10 = por %p67_p8, %p37_p3 }
   0xf   : > { %83 = sbr.rel (%p711_p11) target bundleno = 52 (0x34), region = 16 }
  0x10   : > { %s714_s18 = scalar_select %p531_p10, 1, 0 }
  0x14   : > { %86 = sbr.rel (!%p33_p5) target bundleno = 52 (0x34), region = 20  ;;  %s87_s19 = sand.u32 (%p33_p5), 1, %s460_s8  }
  0x15   : > { %s308_s20 = sshll.u32 (%p33_p5), %s464_s9, 1  ;;  %s307_s21 = sshll.u32 (%p33_p5), %s87_s19, 5 }
  0x16   : > { %s93_s22 = ssub.s32 (%p33_p5), 3, %s308_s20  ;;  %s546_s25 = scalar_lea.sflag (%p33_p5), [#allocation3], %s87_s19 }
  0x17   : > { %p94_p12 = scmp.lt.s32.totalorder (%p33_p5), %s93_s22, 2  ;;  %s91_s26 = scalar_lea.vmem (%p33_p5), [#allocation2], %s307_s21 }
  0x19   : > { %s722_s22 = smov (!%p94_p12, %s93_s22), 2 }
  0x1a   : > { %s543_s23 = sshll.u32 %s722_s22, 8 }
  0x1b   : > { %s98_s24 = ssub.s32 512, %s543_s23 }
  0x1c   : > { %99 = vsyncadd %s546_s25, %s98_s24  ;;  %p310_p13 = scmp.ne.s32.totalorder %s543_s23, 0  ;;  %s325_s27 = sshll.u32 %s464_s9, 8 }
  0x1d   : > { %s554_s30 = scalar_lea.hbm %s709_s0, %s325_s27  ;;  %s312_s2 = sshll.u32 %s722_s22, 3 }
  0x1e   : > { %s105_s3 = sshll.u32 %s91_s26, 4  ;;  %s374_s4 = scalar_lea.hbm %s554_s30, %s543_s23  ;;  %s557_s3 = int_to_ptr.vmem [resolvable:$true] %s105_s3 }
  0x1f   : > { %p375_p0 = scmp.ne.s32.totalorder %s554_s30, %s374_s4  ;;  %s378_s13 = scalar_lea.hbm %s709_s0, 768 }
  0x20   : > { %p379_p3 = scmp.lt.s32.totalorder %s554_s30, %s709_s0  ;;  %p380_p4 = scmp.lt.s32.totalorder %s378_s13, %s374_s4 }
  0x21   : > { %p376_p1 = pnand %p375_p0, %p310_p13 }
  0x22   : > { %p381_p5 = por %p380_p4, %p379_p3 }
  0x23   : > { %p377_p2 = pneg %p376_p1 }
  0x25   : > { %p382_p7 = pnand %p381_p5, %p377_p2 }
  0x27   : > { %385 = shalt.err (!%p382_p7)
}
  0x28   : > { %s386_s20 = scalar_lea.vmem %s557_s3, %s543_s23  ;;  %s466_s21 = smov [#allocation2]  }
  0x29   : > { %p387_p8 = scmp.ne.s32.totalorder %s557_s3, %s386_s20  ;;  %s390_s24 = sshll.u32 %s466_s21, 4  ;;  %s391_s24 = int_to_ptr.vmem [resolvable:$false] %s390_s24 }
  0x2a   : > { %s392_s26 = scalar_lea.vmem %s391_s24, 1024  ;;  %p393_p1 = scmp.lt.s32.totalorder %s557_s3, %s391_s24 }
  0x2b   : > { %p388_p12 = pnand %p387_p8, %p310_p13  ;;  %p394_p11 = scmp.lt.s32.totalorder %s392_s26, %s386_s20 }
  0x2d   : > { %p389_p0 = pneg %p388_p12  ;;  %p395_p10 = por %p394_p11, %p393_p1 }
  0x2f   : > { %p396_p3 = pnand %p395_p10, %p389_p0 }
  0x31   : > { %399 = shalt.err (!%p396_p3)
}
  0x32   : > { %s467_s27 = smov 384   ;;  %s468_s28 = smov 256  }
  0x33   : > { %111 = dma.hbm_to_vmem [thread:$0]  (%p310_p13), %s554_s30, %s543_s23, %s557_s3, %s546_s25, %s467_s27, %s468_s28, %s312_s2  }
  0x34 PF: > { %p315_p2 = scmp.ge.s32.totalorder %s464_s9, 1  ;;  %p113_p4 = scmp.lt.s32.totalorder %s464_s9, 3 }
  0x36   : > { %p114_p11 = pnand %p315_p2, %p113_p4 }
  0x37   : > { %s588_s29 = sand.u32 (!%p114_p11), 1, %s456_s7  }
  0x38   : > { %117 = sbr.rel (%p114_p11) target bundleno = 110 (0x6e), region = 24  ;;  %s316_s4 = sshll.u32 (!%p114_p11), %s588_s29, 5 }
  0x39   : > { %s120_s5 = scalar_lea.sflag (!%p114_p11), [#allocation3], %s588_s29  ;;  %s592_s11 = scalar_lea.vmem (!%p114_p11), [#allocation2], %s316_s4 }
  0x3d   : > { %443 = dma.done.wait (%p522_p6), %s120_s5, 512  }
  0x3e   : > { %445 = vsyncadd (%p522_p6), %s120_s5, 4294966784  ;;  %s329_s22 = smul.u32 160, %s588_s29  ;;  %v469_v0 = vmov 0.0   ;;  %v176_v1 = vld [vmem:[%s592_s11] sm:$0xf]  ;;  %s211_s16 = scalar_lea.sflag [#allocation4], %s588_s29 }
  0x3f   : > { %v177_v2 = vld [vmem:[%s592_s11 + $0x8] sm:$0xf]  ;;  %v186_v3 = vld [vmem:[%s592_s11] sm:$0xf0]  ;;  %v180_v4 = vrot.slane %v176_v1, 5  ;;  %s317_s25 = sshll.u32 (%p527_p9), %s504_s10, 1 }
  0x40   : > { %s599_s23 = scalar_lea.vmem [#allocation5], %s329_s22  ;;  %v181_v5 = vrot.slane %v177_v2, 5  ;;  %v187_v6 = vld [vmem:[%s592_s11 + $0x8] sm:$0xf0]  ;;  %v190_v7 = vld [vmem:[%s592_s11 + $0x10] sm:$0xf] }
  0x41   : > { %152 = vst [vmem:[%s599_s23] sm:$0xff] %v469_v0  ;;  %153 = vst [vmem:[%s599_s23 + $0x8] sm:$0xff] %v469_v0  ;;  %v194_v8 = vrot.slane %v190_v7, 4  ;;  %v191_v9 = vld [vmem:[%s592_s11 + $0x18] sm:$0xf]  ;;  %v200_v10 = vld [vmem:[%s592_s11 + $0x10] sm:$0xf0] }
  0x42   : > { %154 = vst [vmem:[%s599_s23 + $0x10] sm:$0xff] %v469_v0  ;;  %155 = vst [vmem:[%s599_s23 + $0x18] sm:$0xff] %v469_v0  ;;  %v195_v11 = vrot.slane %v191_v9, 4  ;;  %v204_v12 = vrot.slane %v200_v10, 1  ;;  %v201_v13 = vld [vmem:[%s592_s11 + $0x18] sm:$0xf0] }
  0x43   : > { %156 = vst [vmem:[%s599_s23 + $0x20] sm:$0xff] %v469_v0  ;;  %157 = vst [vmem:[%s599_s23 + $0x28] sm:$0xff] %v469_v0  ;;  %v205_v14 = vrot.slane %v201_v13, 1  ;;  %s219_s30 = ssub.s32 (%p527_p9), 3, %s317_s25 }
  0x44   : > { %158 = vst [vmem:[%s599_s23 + $0x30] sm:$0x7] %v469_v0  ;;  %159 = vst [vmem:[%s599_s23 + $0x38] sm:$0x7] %v469_v0  ;;  %p220_p6 = scmp.lt.s32.totalorder (%p527_p9), %s219_s30, 2 }
  0x45   : > { %160 = vst [vmem:[%s599_s23 + $0x30] sm:$0x80] %v469_v0  ;;  %161 = vst [vmem:[%s599_s23 + $0x38] sm:$0x80] %v469_v0 }
  0x46   : > { %162 = vst [vmem:[%s599_s23 + $0x40] sm:$0xf] %v469_v0  ;;  %163 = vst [vmem:[%s599_s23 + $0x48] sm:$0xf] %v469_v0 }
  0x47   : > { %164 = vst [vmem:[%s599_s23 + $0x50] sm:$0xf] %v469_v0  ;;  %165 = vst [vmem:[%s599_s23 + $0x58] sm:$0xf] %v469_v0 }
  0x48   : > { %166 = vst [vmem:[%s599_s23 + $0x60] sm:$0x7] %v469_v0  ;;  %167 = vst [vmem:[%s599_s23 + $0x68] sm:$0x7] %v469_v0 }
  0x49   : > { %168 = vst [vmem:[%s599_s23 + $0x60] sm:$0x80] %v469_v0  ;;  %169 = vst [vmem:[%s599_s23 + $0x68] sm:$0x80] %v469_v0 }
  0x4a   : > { %170 = vst [vmem:[%s599_s23 + $0x70] sm:$0xff] %v469_v0  ;;  %171 = vst [vmem:[%s599_s23 + $0x78] sm:$0xff] %v469_v0 }
  0x4b   : > { %172 = vst [vmem:[%s599_s23 + $0x80] sm:$0xff] %v469_v0  ;;  %173 = vst [vmem:[%s599_s23 + $0x88] sm:$0xff] %v469_v0 }
  0x4c   : > { %174 = vst [vmem:[%s599_s23 + $0x90] sm:$0x3f] %v469_v0  ;;  %175 = vst [vmem:[%s599_s23 + $0x98] sm:$0x3f] %v469_v0  ;;  %217 = sbr.rel (!%p527_p9) target bundleno = 110 (0x6e), region = 32 }
  0x4d   : > { %188 = vst [vmem:[%s599_s23 + $0x40] sm:$0xf0] %v186_v3  ;;  %189 = vst [vmem:[%s599_s23 + $0x48] sm:$0xf0] %v187_v6 }
  0x4e   : > { %184 = vst [vmem:[%s599_s23 + $0x30] sm:$0x78] %v180_v4  ;;  %185 = vst [vmem:[%s599_s23 + $0x38] sm:$0x78] %v181_v5 }
  0x4f   : > { %198 = vst [vmem:[%s599_s23 + $0x50] sm:$0xf0] %v194_v8  ;;  %199 = vst [vmem:[%s599_s23 + $0x58] sm:$0xf0] %v195_v11 }
  0x50   : > { %208 = vst [vmem:[%s599_s23 + $0x60] sm:$0x78] %v204_v12  ;;  %209 = vst [vmem:[%s599_s23 + $0x68] sm:$0x78] %v205_v14 }
  0x51   : > { %s724_s30 = smov (!%p220_p6, %s219_s30), 2 }
  0x52   : > { %s648_s2 = smul.u32 1280, %s724_s30 }
  0x54   : > { %s224_s3 = ssub.s32 2560, %s648_s2 }
  0x55   : > { %225 = vsyncadd %s211_s16, %s224_s3  ;;  %p318_p9 = scmp.ne.s32.totalorder %s648_s2, 0  ;;  %s328_s17 = sshll.u32 %s504_s10, 8 }
  0x56   : > { %s658_s19 = scalar_lea.hbm %s710_s1, %s328_s17  ;;  %s320_s20 = sshll.u32 %s724_s30, 3 }
  0x57   : > { %s231_s21 = sshll.u32 %s599_s23, 4  ;;  %s470_s26 = smov [#allocation5]   ;;  %s662_s21 = int_to_ptr.vmem [resolvable:$true] %s231_s21 }
  0x58   : > { %s400_s24 = scalar_lea.vmem %s662_s21, %s648_s2  ;;  %s404_s27 = sshll.u32 %s470_s26, 4  ;;  %s405_s27 = int_to_ptr.vmem [resolvable:$false] %s404_s27 }
  0x59   : > { %p401_p10 = scmp.ne.s32.totalorder %s662_s21, %s400_s24  ;;  %s406_s10 = scalar_lea.vmem %s405_s27, 5120 }
  0x5a   : > { %p407_p7 = scmp.lt.s32.totalorder %s662_s21, %s405_s27  ;;  %p408_p8 = scmp.lt.s32.totalorder %s406_s10, %s400_s24 }
  0x5b   : > { %p402_p13 = pnand %p401_p10, %p318_p9 }
  0x5c   : > { %p409_p12 = por %p408_p8, %p407_p7 }
  0x5d   : > { %p403_p5 = pneg %p402_p13 }
  0x5f   : > { %p410_p0 = pnand %p409_p12, %p403_p5 }
  0x61   : > { %413 = shalt.err (!%p410_p0)
}
  0x62   : > { %s414_s28 = scalar_lea.hbm %s658_s19, %s648_s2  ;;  %s418_s11 = scalar_lea.hbm %s710_s1, 3840 }
  0x63   : > { %p415_p1 = scmp.ne.s32.totalorder %s658_s19, %s414_s28  ;;  %p419_p4 = scmp.lt.s32.totalorder %s658_s19, %s710_s1 }
  0x64   : > { %p420_p11 = scmp.lt.s32.totalorder %s418_s11, %s414_s28 }
  0x65   : > { %p416_p3 = pnand %p415_p1, %p318_p9 }
  0x66   : > { %p421_p6 = por %p420_p11, %p419_p4 }
  0x67   : > { %p417_p2 = pneg %p416_p3 }
  0x69   : > { %p422_p10 = pnand %p421_p6, %p417_p2 }
  0x6b   : > { %425 = shalt.err (!%p422_p10)
}
  0x6c   : > { %s471_s25 = smov 256   ;;  %s472_s3 = smov 384  }
  0x6d   : > { %237 = dma.vmem_to_hbm [thread:$0]  (%p318_p9), %s662_s21, %s648_s2, %s658_s19, %s211_s16, %s471_s25, %s472_s3, %s320_s20  }
  0x6e PF: > { %s246_s17 = sand.u32 1, %s452_s6   ;;  %p715_p13 = scmp.ne.s32.totalorder %s714_s18, 0 }
  0x6f   : > { %p716_p5 = scmp.ge.s32.totalorder %s464_s9, 2  ;;  %s247_s13 = scalar_lea.sflag [#allocation4], %s246_s17 }
  0x71   : > { %p333_p7 = pnand %p716_p5, %p715_p13 }
  0x73   : > { %p334_p8 = pneg %p333_p7 }
  0x75   : > { %447 = dma.done.wait (%p334_p8), %s247_s13, 2560  }
  0x76   : > { %449 = vsyncadd (%p334_p8), %s247_s13, 4294964736  ;;  %p14_p12 = scmp.ge.s32.totalorder %s508_s12, 4   ;;  %s717_s6 = smov %s456_s7 }
  0x77   : > { %s718_s7 = smov %s460_s8  ;;  %s719_s8 = smov %s520_s15 }
  0x78   : > { %s720_s9 = smov %s508_s12  ;;  %16 = sbr.rel (!%p14_p12) target bundleno = 5 (0x5), region = 69 }
  0x7d   :  { %252 = vsyncpa [#allocation3], 1 }
  0x7e   :  { %254 = vsyncpa [#allocation3 + $0x1], 1 }
  0x7f   :  { %255 = vsyncpa [#allocation4], 1 }
  0x80   :  { %257 = vsyncpa [#allocation4 + $0x1], 1 }

</bundles_post_ra>
